<compile_context>
chip_gen: v6e
topology: v6e:2x2x1
jax: 0.10.0
libtpu: 0.0.40
codegen_flags: <defaults>
</compile_context>

<pallas_src>
import functools

import jax
import jax.numpy as jnp
from jax.experimental import pallas as pl
from jax.experimental.pallas import tpu as pltpu


# ----------------------------------------------------------------------------
# Shared tile math: masked soft affinity for one (S, TN) pixel tile.
# ----------------------------------------------------------------------------
def _affinity_tile(cent, f, pc, sc, a_sm):
    """cent: (S, C2e) f32 centroids (last channel is the zeroed 'ones' slot)
       f:    (C2e, TN) bf16 pixel features (last channel is all-ones)
       pc:   (2, TN)  i32 pixel (y, x) coordinates
       sc:   (S, 4)   i32 per-superpixel window bounds (ylo, yhi, xlo, xhi)
       returns (S, TN) f32 soft assignment (softmax over S per pixel column)."""
    # ||c - p||^2 = c.c + p.p - 2 c.p ; the p.p term is constant per pixel
    # column and cancels in the softmax over superpixels, so it is dropped.
    # The 2*a scale is folded into the matmul operand (bf16 in, f32 acc).
    cross = jax.lax.dot_general(
        (cent * (2.0 * a_sm)).astype(jnp.bfloat16), f,
        (((1,), (0,)), ((), ())),
        preferred_element_type=jnp.float32)                        # (S, TN)
    scores = cross - a_sm * jnp.sum(cent * cent, axis=1, keepdims=True)

    # Geometric candidate mask generated in-kernel (no (S, N) mask stream).
    py = pc[0:1, :]                                                # (1, TN)
    px = pc[1:2, :]
    cover = ((py >= sc[:, 0:1]) & (py <= sc[:, 1:2]) &
             (px >= sc[:, 2:3]) & (px <= sc[:, 3:4]))              # (S, TN)

    logits = jnp.where(cover, scores, -1e30)
    mx = jnp.max(logits, axis=0, keepdims=True)                    # (1, TN)
    p = jnp.exp(logits - mx)              # masked rows underflow to exactly 0
    denom = jnp.sum(p, axis=0, keepdims=True) + 1e-30
    return p * pl.reciprocal(denom, approx=False)                  # (S, TN)


# ----------------------------------------------------------------------------
# Kernel A: centroid refinement (SSN E-step + M-step), grid (B, n_iter-1, NT).
# ----------------------------------------------------------------------------
def _refine_kernel(cent0_ref, f_ref, pc_ref, sc_ref, cent_ref, num_acc,
                   *, a_sm, C2, NT):
    it = pl.program_id(1)
    nt = pl.program_id(2)

    # initialize running centroids once per batch element (output block is
    # resident across (it, nt) for a fixed batch index)
    @pl.when((it == 0) & (nt == 0))
    def _():
        cent_ref[0] = cent0_ref[0]

    # reset per-iteration accumulator at the first pixel tile
    @pl.when(nt == 0)
    def _():
        num_acc[...] = jnp.zeros_like(num_acc)

    f = f_ref[0]                                                   # (C2e, TN)
    aff = _affinity_tile(cent_ref[0], f, pc_ref[...], sc_ref[...], a_sm)

    # accumulate  A @ F^T ; the all-ones channel of f makes column C2 hold the
    # per-superpixel affinity sum, so no separate cross-lane reduction needed.
    num_acc[...] += jax.lax.dot_general(
        aff.astype(jnp.bfloat16), f, (((1,), (1,)), ((), ())),
        preferred_element_type=jnp.float32)                        # (S, C2e)

    # after the last pixel tile of this iteration: centroid update (M-step)
    @pl.when(nt == NT - 1)
    def _():
        num = num_acc[...]
        ssum = num[:, C2:C2 + 1]                                   # (S, 1)
        ch = jax.lax.broadcasted_iota(jnp.int32, num.shape, 1)
        cent_ref[0] = jnp.where(ch < C2, num / (ssum + 1e-16), 0.0)


# ----------------------------------------------------------------------------
# Kernel B: final affinity, grid (B, NT).  Output written exactly once.
# ----------------------------------------------------------------------------
def _assign_kernel(cent_ref, f_ref, pc_ref, sc_ref, a_ref, *, a_sm):
    a_ref[0] = _affinity_tile(cent_ref[0], f_ref[0], pc_ref[...], sc_ref[...],
                              a_sm)


# ----------------------------------------------------------------------------
# Wrapper-side glue (plain JAX).
# ----------------------------------------------------------------------------
def _pool_matrix(in_size, out_size):
    """(out, in) row-stochastic matrix equivalent to adaptive_avg_pool1d."""
    i = jnp.arange(out_size)
    starts = (i * in_size) // out_size
    ends = ((i + 1) * in_size + out_size - 1) // out_size
    pos = jnp.arange(in_size)
    m = ((pos[None, :] >= starts[:, None]) &
         (pos[None, :] < ends[:, None])).astype(jnp.float32)
    return m / jnp.sum(m, axis=1, keepdims=True)


def _choose_pixel_tile(N, S, requested=None):
    if requested is not None:
        tn = int(requested)
        assert tn == N or (tn % 128 == 0 and N % tn == 0), \
            "pixel_tile must equal N or be a multiple of 128 dividing N"
        return tn
    if N % 128 != 0:
        return N                      # small / odd image: single tile
    # keep the ~6 f32 (S, TN) tile temporaries around 24 MiB (fits v7x VMEM)
    cap = max(128, (24 * 1024 * 1024) // (6 * 4 * max(S, 1)))
    tn = int(min(2048, cap, N))
    tn -= tn % 128
    tn = max(tn, 128)
    while N % tn != 0:
        tn -= 128
    return tn


def _vmem_limit_bytes(S, C2e, TN):
    work = 6 * S * TN * 4                       # f32 tile temporaries + out
    bufs = (4 * C2e * TN * 2 + 4 * S * C2e * 4  # f tiles, centroids/accum
            + 4 * 2 * TN * 4 + 4 * S * 4 * 4)   # coord tables
    est = int((work + bufs) * 3 // 2)
    return max(32 * 1024 * 1024, min(est, 56 * 1024 * 1024))


def gen_sp_forward(x, stoken_size, n_iter=2, M=0.0, ws=None,
                   affinity_softmax=1.0, softmax_order="v0", pixel_tile=None):
    assert softmax_order == "v0", "only softmax_order='v0' implemented"
    assert n_iter >= 1
    x = x.astype(jnp.float32)
    B, C, H, W = x.shape
    sh, sw = stoken_size
    nH = (H - 1) // sh + 1
    nW = (W - 1) // sw + 1
    S = nH * nW
    N = H * W
    stride0 = sh
    if ws is None:
        ws = 2 * stride0 - 1
    C2 = C + 2          # real feature channels (image + scaled coord grid)
    C2e = C2 + 1        # + all-ones channel used for affinity row sums

    # pixel features: [x ; scaled coord grid ; ones]  ->  (B, C2e, N)
    yy, xx = jnp.meshgrid(jnp.arange(H, dtype=jnp.float32),
                          jnp.arange(W, dtype=jnp.float32), indexing="ij")
    grid2 = jnp.stack([yy, xx], axis=0) * (float(M) / float(sh))
    grid2 = jnp.broadcast_to(grid2[None], (B, 2, H, W))
    ones = jnp.ones((B, 1, H, W), jnp.float32)
    xg = jnp.concatenate([x, grid2, ones], axis=1)                 # (B,C2e,H,W)
    f_bf = xg.reshape(B, C2e, N).astype(jnp.bfloat16)

    # initial centroids via adaptive average pooling (matrix form)
    Ph = _pool_matrix(H, nH)
    Pw = _pool_matrix(W, nW)
    cent0 = jnp.einsum("oh,bchw,pw->bcop", Ph, xg, Pw)             # (B,C2e,nH,nW)
    cent0 = cent0.reshape(B, C2e, S).transpose(0, 2, 1)            # (B,S,C2e)
    chan_mask = jnp.concatenate(
        [jnp.ones((C2,), jnp.float32), jnp.zeros((1,), jnp.float32)])
    cent0 = cent0 * chan_mask[None, None, :]       # zero the ones-channel slot

    # geometric coordinate tables (replace the dense (S, N) coverage mask)
    py = jnp.repeat(jnp.arange(H, dtype=jnp.int32), W)
    px = jnp.tile(jnp.arange(W, dtype=jnp.int32), H)
    pcoord = jnp.stack([py, px], axis=0)                           # (2, N)
    lo, hi = ws // 2, (ws - 1) // 2
    ay = jnp.repeat(jnp.arange(nH, dtype=jnp.int32) * stride0, nW)
    ax = jnp.tile(jnp.arange(nW, dtype=jnp.int32) * stride0, nH)
    scoord = jnp.stack([ay - lo, ay + hi, ax - lo, ax + hi], axis=1)  # (S, 4)

    TN = _choose_pixel_tile(N, S, pixel_tile)
    NT = N // TN
    vmem_limit = _vmem_limit_bytes(S, C2e, TN)

    cent = cent0
    if n_iter > 1:
        refine = functools.partial(_refine_kernel,
                                   a_sm=float(affinity_softmax), C2=C2, NT=NT)
        cent = pl.pallas_call(
            refine,
            out_shape=jax.ShapeDtypeStruct((B, S, C2e), jnp.float32),
            grid=(B, n_iter - 1, NT),
            in_specs=[
                pl.BlockSpec((1, S, C2e), lambda b, it, nt: (b, 0, 0)),
                pl.BlockSpec((1, C2e, TN), lambda b, it, nt: (b, 0, nt)),
                pl.BlockSpec((2, TN), lambda b, it, nt: (0, nt)),
                pl.BlockSpec((S, 4), lambda b, it, nt: (0, 0)),
            ],
            out_specs=pl.BlockSpec((1, S, C2e), lambda b, it, nt: (b, 0, 0)),
            scratch_shapes=[pltpu.VMEM((S, C2e), jnp.float32)],
            compiler_params=pltpu.CompilerParams(
                dimension_semantics=("parallel", "arbitrary", "arbitrary"),
                vmem_limit_bytes=vmem_limit),
        )(cent0, f_bf, pcoord, scoord)

    assign = functools.partial(_assign_kernel, a_sm=float(affinity_softmax))
    soft_assoc = pl.pallas_call(
        assign,
        out_shape=jax.ShapeDtypeStruct((B, S, N), jnp.float32),
        grid=(B, NT),
        in_specs=[
            pl.BlockSpec((1, S, C2e), lambda b, nt: (b, 0, 0)),
            pl.BlockSpec((1, C2e, TN), lambda b, nt: (b, 0, nt)),
            pl.BlockSpec((2, TN), lambda b, nt: (0, nt)),
            pl.BlockSpec((S, 4), lambda b, nt: (0, 0)),
        ],
        out_specs=pl.BlockSpec((1, S, TN), lambda b, nt: (b, 0, nt)),
        compiler_params=pltpu.CompilerParams(
            dimension_semantics=("parallel", "parallel"),
            vmem_limit_bytes=vmem_limit),
    )(cent, f_bf, pcoord, scoord)

    return soft_assoc, S


class GenSP:
    """JAX/Pallas port of the PyTorch GenSP module (no learned parameters)."""

    def __init__(self, n_iter=2, M=0, ws=None, affinity_softmax=1.0,
                 softmax_order="v0"):
        self.n_iter = n_iter
        self.M = M
        self.ws = ws
        self.affinity_softmax = affinity_softmax
        self.softmax_order = softmax_order

    def __call__(self, x, stoken_size, pixel_tile=None):
        return gen_sp_forward(x, stoken_size, self.n_iter, self.M, self.ws,
                              self.affinity_softmax, self.softmax_order,
                              pixel_tile=pixel_tile)


# ----------------------------------------------------------------------------
# Pure-JAX dense reference (f32) for correctness checking.
# ----------------------------------------------------------------------------
def _reference_gen_sp(x, stoken_size, n_iter, M, ws, a_sm):
    x = x.astype(jnp.float32)
    B, C, H, W = x.shape
    sh, sw = stoken_size
    nH = (H - 1) // sh + 1
    nW = (W - 1) // sw + 1
    S, N = nH * nW, H * W
    stride0 = sh
    if ws is None:
        ws = 2 * stride0 - 1
    yy, xx = jnp.meshgrid(jnp.arange(H, dtype=jnp.float32),
                          jnp.arange(W, dtype=jnp.float32), indexing="ij")
    g = jnp.stack([yy, xx], 0) * (float(M) / float(sh))
    xg = jnp.concatenate([x, jnp.broadcast_to(g[None], (B, 2, H, W))], 1)
    C2 = C + 2
    f = xg.reshape(B, C2, N)
    cent = jnp.einsum("oh,bchw,pw->bcop", _pool_matrix(H, nH), xg,
                      _pool_matrix(W, nW)).reshape(B, C2, S)
    lo, hi = ws // 2, (ws - 1) // 2
    py = jnp.repeat(jnp.arange(H), W)
    px = jnp.tile(jnp.arange(W), H)
    ay = jnp.repeat(jnp.arange(nH) * stride0, nW)
    ax = jnp.tile(jnp.arange(nW) * stride0, nH)
    cover = ((py[None] >= ay[:, None] - lo) & (py[None] <= ay[:, None] + hi) &
             (px[None] >= ax[:, None] - lo) & (px[None] <= ax[:, None] + hi))
    aff = None
    for k in range(n_iter):
        d = (jnp.sum(cent ** 2, 1)[:, :, None] + jnp.sum(f ** 2, 1)[:, None, :]
             - 2.0 * jnp.einsum("bcs,bcn->bsn", cent, f))
        logits = jnp.where(cover[None], -a_sm * d, -jnp.inf)
        logits = logits - jnp.max(logits, axis=1, keepdims=True)
        p = jnp.where(cover[None], jnp.exp(logits), 0.0)
        aff = p / (jnp.sum(p, axis=1, keepdims=True) + 1e-16)
        if k < n_iter - 1:
            num = jnp.einsum("bsn,bcn->bcs", aff, f)
            ssum = jnp.sum(aff, axis=2)[:, None, :]
            cent = num / (ssum + 1e-16)
    return aff


if __name__ == "__main__":
    key = jax.random.PRNGKey(0)
    B, C, H, W = 2, 4, 16, 16
    x = jax.random.normal(key, (B, C, H, W), dtype=jnp.float32)
    stoken_size = (8, 8)

    model = GenSP(n_iter=2, M=0.0, ws=None, affinity_softmax=1.0,
                  softmax_order="v0")
    # pixel_tile=128 -> two pixel tiles, exercising the tiled accumulation path
    soft_association, num_spixels = model(x, stoken_size, pixel_tile=128)
    soft_association = jax.block_until_ready(soft_association)

    assert soft_association.shape == (B, num_spixels, H * W)
    assert bool(jnp.all(jnp.isfinite(soft_association)))
    # per-pixel soft assignments sum to 1 over candidate superpixels
    col_sums = jnp.sum(soft_association, axis=1)
    assert bool(jnp.all(jnp.abs(col_sums - 1.0) < 1e-4))

    # compare against the dense f32 reference (bf16 matmuls -> loose tolerance)
    ref = _reference_gen_sp(x, stoken_size, 2, 0.0, None, 1.0)
    max_err = float(jnp.max(jnp.abs(soft_association - ref)))
    assert max_err < 5e-2, f"max abs err vs reference: {max_err}"

    print("KERNEL_OK")
</pallas_src>

<mosaic_0001>
module attributes {stable_mosaic.version = 11 : i64} {
  func.func @_refine_kernel(%arg0: i32, %arg1: i32, %arg2: i32, %arg3: memref<1x4x7xf32, #tpu.memory_space<vmem>>, %arg4: memref<1x7x128xbf16, #tpu.memory_space<vmem>>, %arg5: memref<2x128xi32, #tpu.memory_space<vmem>>, %arg6: memref<4x4xi32, #tpu.memory_space<vmem>>, %arg7: memref<1x4x7xf32, #tpu.memory_space<vmem>>, %arg8: memref<4x7xf32, #tpu.memory_space<vmem>>) attributes {dimension_semantics = [#tpu.dimension_semantics<parallel>, #tpu.dimension_semantics<arbitrary>, #tpu.dimension_semantics<arbitrary>], iteration_bounds = array<i64: 2, 1, 2>, scalar_prefetch = 0 : i64, scratch_operands = 1 : i64, tpu.core_type = #tpu.core_type<tc>, window_params = [{transform_indices = @transform_0, window_bounds = array<i64: 1, 4, 7>}, {transform_indices = @transform_1, window_bounds = array<i64: 1, 7, 128>}, {transform_indices = @transform_2, window_bounds = array<i64: 2, 128>}, {pipeline_mode = #tpu.pipeline_mode<synchronous>, transform_indices = @transform_3, window_bounds = array<i64: 4, 4>}, {transform_indices = @transform_4, window_bounds = array<i64: 1, 4, 7>}]} {
    %c0_i32 = arith.constant 0 : i32
    %0 = arith.cmpi eq, %arg1, %c0_i32 : i32
    %c0_i32_0 = arith.constant 0 : i32
    %1 = arith.cmpi eq, %arg2, %c0_i32_0 : i32
    %2 = arith.andi %0, %1 : i1
    %3 = arith.extui %2 : i1 to i32
    %c0_i32_1 = arith.constant 0 : i32
    %4 = arith.cmpi ne, %3, %c0_i32_1 : i32
    scf.if %4 {
      %c0_26 = arith.constant 0 : index
      %c0_27 = arith.constant 0 : index
      %c0_28 = arith.constant 0 : index
      %68 = vector.load %arg3[%c0_26, %c0_27, %c0_28] : memref<1x4x7xf32, #tpu.memory_space<vmem>>, vector<1x4x7xf32>
      %69 = vector.shape_cast %68 : vector<1x4x7xf32> to vector<4x7xf32>
      %c0_29 = arith.constant 0 : index
      %c0_30 = arith.constant 0 : index
      %c0_31 = arith.constant 0 : index
      %70 = vector.load %arg7[%c0_29, %c0_30, %c0_31] : memref<1x4x7xf32, #tpu.memory_space<vmem>>, vector<1x4x7xf32>
      %71 = vector.shape_cast %70 : vector<1x4x7xf32> to vector<4x7xf32>
      %72 = vector.shape_cast %69 : vector<4x7xf32> to vector<1x4x7xf32>
      tpu.vector_store %arg7[%c0_29, %c0_30, %c0_31], %72 {strides = array<i32>} : memref<1x4x7xf32, #tpu.memory_space<vmem>>, vector<1x4x7xf32>,
    } else {
    }
    %c0_i32_2 = arith.constant 0 : i32
    %5 = arith.cmpi eq, %arg2, %c0_i32_2 : i32
    %6 = arith.extui %5 : i1 to i32
    %c0_i32_3 = arith.constant 0 : i32
    %7 = arith.cmpi ne, %6, %c0_i32_3 : i32
    scf.if %7 {
      %cst_26 = arith.constant 0.000000e+00 : f32
      %68 = vector.broadcast %cst_26 : f32 to vector<4x7xf32>
      %c0_27 = arith.constant 0 : index
      %c0_28 = arith.constant 0 : index
      %69 = vector.load %arg8[%c0_27, %c0_28] : memref<4x7xf32, #tpu.memory_space<vmem>>, vector<4x7xf32>
      tpu.vector_store %arg8[%c0_27, %c0_28], %68 {strides = array<i32>} : memref<4x7xf32, #tpu.memory_space<vmem>>, vector<4x7xf32>,
    } else {
    }
    %c0 = arith.constant 0 : index
    %c0_4 = arith.constant 0 : index
    %c0_5 = arith.constant 0 : index
    %8 = vector.load %arg4[%c0, %c0_4, %c0_5] : memref<1x7x128xbf16, #tpu.memory_space<vmem>>, vector<1x7x128xbf16>
    %9 = vector.shape_cast %8 : vector<1x7x128xbf16> to vector<7x128xbf16>
    %c0_6 = arith.constant 0 : index
    %c0_7 = arith.constant 0 : index
    %c0_8 = arith.constant 0 : index
    %10 = vector.load %arg7[%c0_6, %c0_7, %c0_8] : memref<1x4x7xf32, #tpu.memory_space<vmem>>, vector<1x4x7xf32>
    %11 = vector.shape_cast %10 : vector<1x4x7xf32> to vector<4x7xf32>
    %c0_9 = arith.constant 0 : index
    %c0_10 = arith.constant 0 : index
    %12 = vector.load %arg5[%c0_9, %c0_10] : memref<2x128xi32, #tpu.memory_space<vmem>>, vector<2x128xi32>
    %c0_11 = arith.constant 0 : index
    %c0_12 = arith.constant 0 : index
    %13 = vector.load %arg6[%c0_11, %c0_12] : memref<4x4xi32, #tpu.memory_space<vmem>>, vector<4x4xi32>
    %cst = arith.constant 2.000000e+00 : f32
    %14 = vector.broadcast %cst : f32 to vector<4x7xf32>
    %15 = arith.mulf %11, %14 : vector<4x7xf32>
    %16 = arith.truncf %15 : vector<4x7xf32> to vector<4x7xbf16>
    %cst_13 = arith.constant dense<0.000000e+00> : vector<4x128xf32>
    %17 = tpu.matmul %16, %9, %cst_13 {dimension_numbers = #tpu.dot_dimension_numbers<[1], [0], [0], [1], [0, 0, 1, 1], [], []>} : vector<4x7xbf16>, vector<7x128xbf16>, vector<4x128xf32> -> vector<4x128xf32>
    %18 = arith.mulf %11, %11 : vector<4x7xf32>
    %cst_14 = arith.constant dense<0.000000e+00> : vector<4xf32>
    %19 = vector.multi_reduction <add>, %18, %cst_14 [1] : vector<4x7xf32> to vector<4xf32>
    %20 = vector.shape_cast %19 : vector<4xf32> to vector<4x1xf32>
    %cst_15 = arith.constant 1.000000e+00 : f32
    %21 = vector.broadcast %cst_15 : f32 to vector<4x1xf32>
    %22 = arith.mulf %21, %20 : vector<4x1xf32>
    %23 = vector.broadcast %22 : vector<4x1xf32> to vector<4x128xf32>
    %24 = arith.subf %17, %23 : vector<4x128xf32>
    %25 = vector.extract_strided_slice %12 {offsets = [0, 0], sizes = [1, 128], strides = [1, 1]} : vector<2x128xi32> to vector<1x128xi32>
    %26 = vector.extract_strided_slice %12 {offsets = [1, 0], sizes = [1, 128], strides = [1, 1]} : vector<2x128xi32> to vector<1x128xi32>
    %27 = vector.extract_strided_slice %13 {offsets = [0, 0], sizes = [4, 1], strides = [1, 1]} : vector<4x4xi32> to vector<4x1xi32>
    %28 = vector.broadcast %25 : vector<1x128xi32> to vector<4x128xi32>
    %29 = vector.broadcast %27 : vector<4x1xi32> to vector<4x128xi32>
    %30 = arith.cmpi sge, %28, %29 : vector<4x128xi32>
    %31 = vector.extract_strided_slice %13 {offsets = [0, 1], sizes = [4, 1], strides = [1, 1]} : vector<4x4xi32> to vector<4x1xi32>
    %32 = vector.broadcast %25 : vector<1x128xi32> to vector<4x128xi32>
    %33 = vector.broadcast %31 : vector<4x1xi32> to vector<4x128xi32>
    %34 = arith.cmpi sle, %32, %33 : vector<4x128xi32>
    %35 = arith.andi %30, %34 : vector<4x128xi1>
    %36 = vector.extract_strided_slice %13 {offsets = [0, 2], sizes = [4, 1], strides = [1, 1]} : vector<4x4xi32> to vector<4x1xi32>
    %37 = vector.broadcast %26 : vector<1x128xi32> to vector<4x128xi32>
    %38 = vector.broadcast %36 : vector<4x1xi32> to vector<4x128xi32>
    %39 = arith.cmpi sge, %37, %38 : vector<4x128xi32>
    %40 = arith.andi %35, %39 : vector<4x128xi1>
    %41 = vector.extract_strided_slice %13 {offsets = [0, 3], sizes = [4, 1], strides = [1, 1]} : vector<4x4xi32> to vector<4x1xi32>
    %42 = vector.broadcast %26 : vector<1x128xi32> to vector<4x128xi32>
    %43 = vector.broadcast %41 : vector<4x1xi32> to vector<4x128xi32>
    %44 = arith.cmpi sle, %42, %43 : vector<4x128xi32>
    %45 = arith.andi %40, %44 : vector<4x128xi1>
    %cst_16 = arith.constant -1.000000e+30 : f32
    %46 = vector.broadcast %cst_16 : f32 to vector<4x128xf32>
    %47 = arith.select %45, %24, %46 : vector<4x128xi1>, vector<4x128xf32>
    %cst_17 = arith.constant dense<0xFF800000> : vector<128xf32>
    %48 = vector.multi_reduction <maximumf>, %47, %cst_17 [0] : vector<4x128xf32> to vector<128xf32>
    %49 = vector.shape_cast %48 : vector<128xf32> to vector<1x128xf32>
    %50 = vector.broadcast %49 : vector<1x128xf32> to vector<4x128xf32>
    %51 = arith.subf %47, %50 : vector<4x128xf32>
    %52 = math.exp %51 : vector<4x128xf32>
    %cst_18 = arith.constant dense<0.000000e+00> : vector<128xf32>
    %53 = vector.multi_reduction <add>, %52, %cst_18 [0] : vector<4x128xf32> to vector<128xf32>
    %54 = vector.shape_cast %53 : vector<128xf32> to vector<1x128xf32>
    %cst_19 = arith.constant 1.000000e-30 : f32
    %55 = vector.broadcast %cst_19 : f32 to vector<1x128xf32>
    %56 = arith.addf %54, %55 : vector<1x128xf32>
    %57 = tpu.reciprocal %56 : vector<1x128xf32> -> vector<1x128xf32>
    %58 = vector.broadcast %57 : vector<1x128xf32> to vector<4x128xf32>
    %59 = arith.mulf %52, %58 : vector<4x128xf32>
    %c0_20 = arith.constant 0 : index
    %c0_21 = arith.constant 0 : index
    %60 = vector.load %arg8[%c0_20, %c0_21] : memref<4x7xf32, #tpu.memory_space<vmem>>, vector<4x7xf32>
    %61 = arith.truncf %59 : vector<4x128xf32> to vector<4x128xbf16>
    %cst_22 = arith.constant dense<0.000000e+00> : vector<4x7xf32>
    %62 = tpu.matmul %61, %9, %cst_22 {dimension_numbers = #tpu.dot_dimension_numbers<[1], [1], [0], [0], [0, 0, 1, 0], [], []>} : vector<4x128xbf16>, vector<7x128xbf16>, vector<4x7xf32> -> vector<4x7xf32>
    %63 = arith.addf %60, %62 : vector<4x7xf32>
    %c0_23 = arith.constant 0 : index
    %c0_24 = arith.constant 0 : index
    %64 = vector.load %arg8[%c0_23, %c0_24] : memref<4x7xf32, #tpu.memory_space<vmem>>, vector<4x7xf32>
    tpu.vector_store %arg8[%c0_23, %c0_24], %63 {strides = array<i32>} : memref<4x7xf32, #tpu.memory_space<vmem>>, vector<4x7xf32>,
    %c1_i32 = arith.constant 1 : i32
    %65 = arith.cmpi eq, %arg2, %c1_i32 : i32
    %66 = arith.extui %65 : i1 to i32
    %c0_i32_25 = arith.constant 0 : i32
    %67 = arith.cmpi ne, %66, %c0_i32_25 : i32
    scf.if %67 {
      %c0_26 = arith.constant 0 : index
      %c0_27 = arith.constant 0 : index
      %68 = vector.load %arg8[%c0_26, %c0_27] : memref<4x7xf32, #tpu.memory_space<vmem>>, vector<4x7xf32>
      %69 = vector.extract_strided_slice %68 {offsets = [0, 6], sizes = [4, 1], strides = [1, 1]} : vector<4x7xf32> to vector<4x1xf32>
      %70 = tpu.iota {dimensions = array<i32: 1>} : vector<4x7xi32>
      %c6_i32 = arith.constant 6 : i32
      %71 = vector.broadcast %c6_i32 : i32 to vector<4x7xi32>
      %72 = arith.cmpi slt, %70, %71 : vector<4x7xi32>
      %cst_28 = arith.constant 1.000000e-16 : f32
      %73 = vector.broadcast %cst_28 : f32 to vector<4x1xf32>
      %74 = arith.addf %69, %73 : vector<4x1xf32>
      %75 = vector.broadcast %74 : vector<4x1xf32> to vector<4x7xf32>
      %76 = arith.divf %68, %75 : vector<4x7xf32>
      %cst_29 = arith.constant 0.000000e+00 : f32
      %77 = vector.broadcast %cst_29 : f32 to vector<4x7xf32>
      %78 = arith.select %72, %76, %77 : vector<4x7xi1>, vector<4x7xf32>
      %c0_30 = arith.constant 0 : index
      %c0_31 = arith.constant 0 : index
      %c0_32 = arith.constant 0 : index
      %79 = vector.load %arg7[%c0_30, %c0_31, %c0_32] : memref<1x4x7xf32, #tpu.memory_space<vmem>>, vector<1x4x7xf32>
      %80 = vector.shape_cast %79 : vector<1x4x7xf32> to vector<4x7xf32>
      %81 = vector.shape_cast %78 : vector<4x7xf32> to vector<1x4x7xf32>
      tpu.vector_store %arg7[%c0_30, %c0_31, %c0_32], %81 {strides = array<i32>} : memref<1x4x7xf32, #tpu.memory_space<vmem>>, vector<1x4x7xf32>,
    } else {
    }
    return
  }
  func.func @transform_0(%arg0: i32, %arg1: i32, %arg2: i32) -> (i32, i32, i32) {
    %c0_i32 = arith.constant 0 : i32
    %c0_i32_0 = arith.constant 0 : i32
    %c0_i32_1 = arith.constant 0 : i32
    return %arg0, %c0_i32, %c0_i32_0 : i32, i32, i32
  }
  func.func @transform_1(%arg0: i32, %arg1: i32, %arg2: i32) -> (i32, i32, i32) {
    %c0_i32 = arith.constant 0 : i32
    %c0_i32_0 = arith.constant 0 : i32
    return %arg0, %c0_i32, %arg2 : i32, i32, i32
  }
  func.func @transform_2(%arg0: i32, %arg1: i32, %arg2: i32) -> (i32, i32) {
    %c0_i32 = arith.constant 0 : i32
    %c0_i32_0 = arith.constant 0 : i32
    return %c0_i32, %arg2 : i32, i32
  }
  func.func @transform_3(%arg0: i32, %arg1: i32, %arg2: i32) -> (i32, i32) {
    %c0_i32 = arith.constant 0 : i32
    %c0_i32_0 = arith.constant 0 : i32
    %c0_i32_1 = arith.constant 0 : i32
    return %c0_i32, %c0_i32_0 : i32, i32
  }
  func.func @transform_4(%arg0: i32, %arg1: i32, %arg2: i32) -> (i32, i32, i32) {
    %c0_i32 = arith.constant 0 : i32
    %c0_i32_0 = arith.constant 0 : i32
    %c0_i32_1 = arith.constant 0 : i32
    return %arg0, %c0_i32, %c0_i32_0 : i32, i32, i32
  }
}

</mosaic_0001>

<bundles_post_ra>
// kernel: tpu_custom_call.1
= control target key start
LH: loop header
LB: loop body
LE: loop exit
PB: predicated region body
PF: predicated region fallthrough
CT: control target
= control target key end

     0   :  { %9 = vsyncpa [#allocation4], 0  ;;  %s975_s0 = inlined_call_operand.vmem [shape: f32[2,4,7], index: 0, kind: input, shape index: {}]   ;;  %s976_s1 = inlined_call_operand.vmem [shape: bf16[2,7,256], index: 1, kind: input, shape index: {}]   ;;  %s977_s2 = inlined_call_operand.vmem [shape: s32[2,256], index: 2, kind: input, shape index: {}]   ;;  %s978_s3 = inlined_call_operand.vmem [shape: s32[4,4], index: 3, kind: input, shape index: {}]   ;;  %s979_s4 = inlined_call_operand.hbm [shape: f32[2,4,7], index: 4, kind: output, shape index: {}]  }
   0x1   :  { %11 = vsyncpa [#allocation4 + $0x1], 0  ;;  %s821_s15 = smov 0   ;;  %s823_s16 = smov 0  }
   0x2   :  { %s825_s17 = smov 0   ;;  %s827_s18 = smov 0  }
   0x3   :  { %s829_s19 = smov 0   ;;  %s831_s20 = smov 0  }
   0x4   :  { %s833_s21 = smov 0   ;;  %s835_s22 = smov 0  }
   0x5 LB: > { %984 = sst [smem:[#allocation6_spill]] %s776_s20  ;;  %s565_s23 = sadd.s32 4294967295, %s784_s22   ;;  %s784_s22 = sphi %s835_s22, %s17_s22   ;;  %s780_s21 = sphi %s833_s21, %s1000_s21   ;;  %s776_s20 = sphi %s831_s20, %s995_s20   ;;  %s772_s19 = sphi %s829_s19, %s994_s19   ;;  %s768_s18 = sphi %s827_s18, %s993_s18   ;;  %s764_s17 = sphi %s825_s17, %s999_s17   ;;  %s760_s16 = sphi %s823_s16, %s998_s16   ;;  %s756_s15 = sphi %s821_s15, %s997_s15  }
   0x6   : > { %985 = sst [smem:[#allocation7_spill]] %s780_s21  ;;  %s566_s24 = sadd.s32 4294967294, %s784_s22  }
   0x7   : > { %s29_s25 = sadd.s32 1, %s776_s20  ;;  %s36_s26 = sadd.s32 1, %s780_s21 }
   0x8   : > { %p30_p0 = scmp.ge.s32.totalorder %s29_s25, 2  ;;  %p154_p1 = scmp.ne.s32.totalorder %s764_s17, %s760_s16 }
   0x9   : > { %p155_p2 = scmp.eq.s32.totalorder %s565_s23, 3  ;;  %p160_p4 = scmp.ne.s32.totalorder %s760_s16, %s756_s15 }
   0xa   : > { %s1002_s25 = smov (%p30_p0, %s29_s25), 0  ;;  %s1004_s26 = smov (!%p30_p0, %s36_s26), %s780_s21 }
   0xb   : > { %986 = sst [smem:[#allocation8_spill]] %s1002_s25  ;;  %p870_p3 = por %p155_p2, %p154_p1 }
   0xc   : > { %p38_p5 = scmp.ge.s32.totalorder %s1004_s26, 2  ;;  %p161_p6 = scmp.eq.s32.totalorder %s566_s24, 3 }
   0xd   : > { %p569_p7 = scmp.ge.s32.totalorder %s784_s22, 1  ;;  %p207_p8 = scmp.lt.s32.totalorder %s784_s22, 5 }
   0xe   : > { %s1006_s26 = smov (%p38_p5, %s1004_s26), 0  ;;  %p880_p9 = por %p161_p6, %p160_p4 }
   0xf   : > { %988 = sst [smem:[#allocation9_spill]] %s1006_s26  ;;  %p208_p10 = pnand %p569_p7, %p207_p8 }
  0x10   : > { %s141_s29 = ssub.s32 %s780_s21, %s1006_s26  ;;  %s144_s30 = sadd.s32 1, %s764_s17 }
  0x11   : > { %p142_p11 = scmp.eq.s32.totalorder %s141_s29, 0  ;;  %211 = sbr.rel (%p208_p10) target bundleno = 681 (0x2a9), region = 36 }
  0x12   : > { %s983_s6 = sand.u32 (!%p208_p10), 1, %s760_s16   ;;  %p244_p12 = scmp.lt.s32.totalorder (!%p208_p10), %s772_s19, 1 }
  0x13   : > { %s888_s5 = scalar_select %p142_p11, %s764_s17, %s144_s30  }
  0x14   : > { %s570_s7 = sshll.u32 (!%p208_p10), %s983_s6, 2  ;;  %p250_p13 = scmp.lt.s32.totalorder (!%p208_p10), %s768_s18, 1 }
  0x15   : > { %990 = sst [smem:[#allocation10_spill]] %s888_s5  ;;  %p262_p0 = scmp.eq.s32.totalorder (!%p208_p10), %s768_s18, 0 }
  0x16   : > { %s245_s8 = scalar_select %p244_p12, %s772_s19, 1  ;;  %vm268_vm0 = vcmask (%p262_p0), 52224  }
  0x17   : > { %s251_s9 = scalar_select %p250_p13, %s768_s18, 1 }
  0x18   : > { %s571_s10 = sshll.u32 %s245_s8, 2  ;;  %s572_s11 = sshll.u32 %s245_s8, 1 }
  0x19   : > { %s247_s14 = scalar_lea.vmem %s975_s0, %s571_s10  ;;  %s253_s23 = sadd.s32 %s572_s11, %s251_s9 }
  0x1a   : > { %s573_s24 = sshll.u32 %s253_s23, 2  ;;  %s574_s29 = sshll.u32 %s251_s9, 1  ;;  %v267_v0 = vld [vmem:[%s247_s14] sm:$0xf] (%p262_p0) }
  0x1b   : > { %s255_s25 = scalar_lea.vmem %s976_s1, %s573_s24  ;;  %s907_s6 = scalar_lea.vmem %s977_s2, %s574_s29 }
  0x1c   : > { %s909_s5 = scalar_lea.vmem [#allocation3], %s570_s7  ;;  %266 = sbr.rel (!%p262_p0) target bundleno = 33 (0x21), region = 40 }
  0x1d   : > { %269 = vst.msk [vmem:[%s909_s5] sm:$0xf] (%p262_p0), %vm268_vm0, %v267_v0 }
  0x21 PF: > { %p576_p1 = scmp.ne.s32.totalorder %s768_s18, 0 }
  0x23   : > { %272 = sbr.rel (%p576_p1) target bundleno = 42 (0x2a), region = 44 }
  0x28   : > { %vm273_vm1 = vcmask 52224   ;;  %v786_v1 = vmov 0.0  }
  0x29   : > { %274 = vst.msk [vmem:[#allocation2] sm:$0xf] %vm273_vm1, %v786_v1 }
  0x2a PF: > { %v275_v2 = vld [vmem:[%s255_s25] sm:$0xf]  ;;  %vm285_vm2 = vcmask 1042432   ;;  %vm286_vm3 = vcmask 1043456   ;;  %v787_v3 = vmov 0.0   ;;  %v788_v4 = vmov 65535  }
  0x2b   : > { %588 = vmatprep.subr.bf16.mxu0 %v787_v3  ;;  %v287_v5 = vsel %vm285_vm2, 4294967295, %v788_v4  ;;  %v276_v6 = vld [vmem:[%s909_s5] sm:$0xf]  ;;  %vm333_vm4 = vcmask 52224   ;;  %594 = vmatprep.subr.bf16.mxu1 %v787_v3  ;;  %vm789_vm5 = vmmov 0   ;;  %v790_v12 = vmov 1  }
  0x2c   : > { %v288_v7 = vsel %vm286_vm3, %v287_v5, 0  ;;  %590 = vmatprep.mubr.msk.bf16.mxu0 %vm789_vm5, %v787_v3  ;;  %v279_v8 = vmul.f32 2.0, %v276_v6  ;;  %v332_v9 = vmul.f32 %v276_v6, %v276_v6  ;;  %v278_v10 = vld [vmem:[%s978_s3] sm:$0xf]  ;;  %595 = vmatpush3.bf16.xpose.msra.mxu1 %v275_v2  ;;  %v791_v15 = vmov 0   ;;  %p578_p2 = scmp.ne.s32.totalorder %s768_s18, 1 }
  0x2d   : > { %v290_v11 = vand.u32 %v288_v7, %v275_v2  ;;  %681 = vset.pattern.permute.xlu1 %v790_v12  ;;  %596 = vmatprep.mubr.msk.bf16.mxu1 %vm789_vm5, %v787_v3  ;;  %vm281_vm6 = vcmask 56320   ;;  %v792_v16 = vmov 2   ;;  %v793_v17 = vmov 3   ;;  %v277_v23 = vld [vmem:[%s907_s6] sm:$0x3] }
  0x2e   : > { %v280_v13 = vpack.c.bf16 %v279_v8, %v279_v8  ;;  %v334_v14 = vsel %vm333_vm4, %v332_v9, 0.0  ;;  %347 = vperm.xlu1 %681, %v278_v10   ;;  %680 = vset.pattern.permute.xlu0 %v791_v15  ;;  %v338_v18 = vlaneseq }
  0x2f   : > { %589 = vmatpush3.bf16.msra.mxu0 %v290_v11  ;;  %335 = vadd.xlane.f32.xlu0 %v334_v14 }
  0x30   : > { %v339_v19 = vshrl.u32 %v338_v18, 7  ;;  %v386_v57 = vld [vmem:[#allocation2] sm:$0xf] }
  0x32   : > { %591 = vmatmul.mubr.msk.bf16.vlgmr.msra.gmra.mxu0 %vm281_vm6, %v280_v13  ;;  %682 = vset.pattern.permute.xlu1 %v792_v16  ;;  %v340_v22 = vsub.s32 0, %v339_v19  ;;  %v353_v24 = vsub.s32 1, %v339_v19 }
  0x33   : > { %356 = vperm.xlu1 %682, %v278_v10  }
  0x34   : > { %v341_v25 = vrot.slane %v277_v23, %v340_v22  ;;  %v354_v28 = vrot.slane %v277_v23, %v353_v24 }
  0x37   : > { %683 = vset.pattern.permute.xlu1 %v793_v17 }
  0x38   : > { %361 = vperm.xlu1 %683, %v278_v10  }
  0x45   : > { %343 = vperm.xlu0 %680, %v278_v10  }
  0x49   : > { %684 = vset.pattern.permute.xlu0 %v793_v17 }
  0xa9   : > { %v348_v20 = vpop.permute.xlu1 %347 }
  0xaa   : > { %vm349_vm7 = vcmp.le.s32.totalorder %v341_v25, %v348_v20 }
  0xae   : > { %v357_v26 = vpop.permute.xlu1 %356 }
  0xaf   : > { %vm358_vm9 = vcmp.ge.s32.totalorder %v354_v28, %v357_v26 }
  0xb3   : > { %v362_v29 = vpop.permute.xlu1 %361 }
  0xb4   : > { %vm363_vm12 = vcmp.le.s32.totalorder %v354_v28, %v362_v29 }
  0xb8   : > { %v336_v21 = vpop.xlane.xlu0 %335 }
  0xc0   : > { %v344_v27 = vpop.permute.xlu0 %343 }
  0xc1   : > { %vm345_vm8 = vcmp.ge.s32.totalorder %v341_v25, %v344_v27 }
  0xc2   : > { %vm350_vm10 = vmand %vm345_vm8, %vm349_vm7 }
  0xc3   : > { %vm359_vm11 = vmand %vm350_vm10, %vm358_vm9 }
  0xc4   : > { %vm364_vm13 = vmand %vm359_vm11, %vm363_vm12 }
  0xf2   : > { %v326_v30 = vpop.f32.mrf.mxu0 }
  0xf3   : > { %v337_v31 = vsub.f32 %v326_v30, %v336_v21 }
  0xf4   : > { %v592_v32 = vpop.f32.mrf.mxu0 }
  0xf5   : > { %v365_v33 = vsel %vm364_vm13, %v337_v31, -1e+30 }
  0xf6   : > { %v366_v34 = vsel %vm286_vm3, %v365_v33, -inf  ;;  %v329_v35 = vpop.f32.mrf.mxu0 }
  0xf7   : > { %v367_v36 = vrot.slane %v366_v34, 4 }
  0xf8   : > { %v593_v37 = vpop.f32.mrf.mxu0 }
  0xf9   : > { %v368_v38 = vmax.f32 %v366_v34, %v367_v36 }
  0xfb   : > { %v369_v39 = vrot.slane %v368_v38, 2 }
  0xfd   : > { %v370_v40 = vmax.f32 %v368_v38, %v369_v39 }
  0xff   : > { %v371_v41 = vrot.slane %v370_v40, 1 }
 0x101   : > { %v372_v42 = vmax.f32 %v370_v40, %v371_v41 }
 0x103   : > { %v373_v43 = vsub.f32 %v365_v33, %v372_v42 }
 0x105   : > { %v374_v44 = vmul.f32 1.442695, %v373_v43 }
 0x107   : > { %685 = vpow2.f32 %v374_v44 }
 0x114   : > { %v686_v45 = vpop.eup %685 }
 0x115   : > { %v376_v46 = vsel %vm286_vm3, %v686_v45, 0.0 }
 0x116   : > { %v377_v47 = vrot.slane %v376_v46, 4 }
 0x118   : > { %v378_v48 = vadd.f32 %v377_v47, %v376_v46 }
 0x11a   : > { %v379_v49 = vrot.slane %v378_v48, 2 }
 0x11c   : > { %v380_v50 = vadd.f32 %v379_v49, %v378_v48 }
 0x11e   : > { %v381_v51 = vrot.slane %v380_v50, 1 }
 0x120   : > { %v382_v52 = vadd.f32 %v381_v51, %v380_v50 }
 0x122   : > { %v383_v53 = vadd.f32 1e-30, %v382_v52 }
 0x124   : > { %687 = vrcp.f32 %v383_v53 }
 0x131   : > { %v688_v54 = vpop.eup %687 }
 0x132   : > { %v385_v55 = vmul.f32 %v688_v54, %v686_v45 }
 0x134   : > { %v387_v56 = vpack.c.bf16 %v385_v55, %v385_v55 }
 0x136   : > { %597 = vmatmul.mubr.bf16.vlgmr.msra.gmra.mxu1 %v387_v56 }
 0x1f6   : > { %v422_v58 = vpop.f32.mrf.mxu1 }
 0x1f7   : > { %v428_v59 = vadd.f32 %v422_v58, %v386_v57 }
 0x1f8   : > { %v598_v60 = vpop.f32.mrf.mxu1  ;;  %433 = sbr.rel (%p578_p2) target bundleno = 657 (0x291), region = 48 }
 0x1f9   : > { %429 = vst.msk [vmem:[#allocation2] sm:$0xf] %vm333_vm4, %v428_v59 }
 0x1fa   : > { %v425_v61 = vpop.f32.mrf.mxu1 }
 0x1fc   : > { %v599_v62 = vpop.f32.mrf.mxu1 }
 0x1fd   : > { %v794_v0 = vmov 6   ;;  %v436_v3 = vand.u32 127, %v338_v18 }
 0x1fe   : > { %689 = vset.pattern.permute.xlu0 %v794_v0 }
 0x1ff   : > { %vm437_vm14 = vcmp.lt.s32.totalorder %v436_v3, 6 }
 0x200   : > { %v434_v63 = vld [vmem:[#allocation2] sm:$0xf] }
 0x201   : > { %v438_v1 = vadd.f32 1e-16, %v434_v63 }
 0x203   : > { %441 = vperm.xlu0 %689, %v438_v1  }
 0x27e   : > { %v442_v2 = vpop.permute.xlu0 %441 }
 0x27f   : > { %690 = vrcp.f32 %v442_v2 }
 0x28c   : > { %v691_v4 = vpop.eup %690 }
 0x28d   : > { %v445_v5 = vmul.f32 %v691_v4, %v434_v63 }
 0x28f   : > { %v446_v6 = vsel %vm437_vm14, %v445_v5, 0.0 }
 0x290   : > { %447 = vst.msk [vmem:[%s909_s5] sm:$0xf] %vm333_vm4, %v446_v6 }
 0x291 PF: > { %s580_s18 = sshll.u32 %s772_s19, 6  ;;  %s462_s7 = sshll.u32 %s909_s5, 4  ;;  %s463_s7 = int_to_ptr.vmem [resolvable:$true] %s462_s7 }
 0x292   : > { %s460_s6 = scalar_lea.hbm %s979_s4, %s580_s18  ;;  %s991_s8 = sand.u32 1, %s760_s16  }
 0x293   : > { %s449_s9 = scalar_lea.sflag [#allocation4], %s991_s8  ;;  %s692_s10 = scalar_lea.vmem %s463_s7, 64 }
 0x294   : > { %p693_p4 = scmp.ne.s32.totalorder %s463_s7, %s692_s10  ;;  %s795_s11 = smov [#allocation3]  }
 0x295   : > { %s696_s12 = sshll.u32 %s795_s11, 4  ;;  %s697_s12 = int_to_ptr.vmem [resolvable:$false] %s696_s12 }
 0x296   : > { %p694_p5 = pnand %p693_p4, %p870_p3  ;;  %s698_s13 = scalar_lea.vmem %s697_s12, 128 }
 0x297   : > { %p699_p7 = scmp.lt.s32.totalorder %s463_s7, %s697_s12  ;;  %p700_p8 = scmp.lt.s32.totalorder %s698_s13, %s692_s10 }
 0x298   : > { %p695_p6 = pneg %p694_p5 }
 0x299   : > { %p701_p10 = por %p700_p8, %p699_p7 }
 0x29b   : > { %p702_p11 = pnand %p701_p10, %p695_p6 }
 0x29d   : > { %705 = shalt.err (!%p702_p11)
}
 0x29e   : > { %s706_s19 = scalar_lea.hbm %s460_s6, 64  ;;  %s710_s23 = scalar_lea.hbm %s979_s4, 128 }
 0x29f   : > { %p707_p12 = scmp.ne.s32.totalorder %s460_s6, %s706_s19  ;;  %p711_p1 = scmp.lt.s32.totalorder %s460_s6, %s979_s4 }
 0x2a0   : > { %p712_p2 = scmp.lt.s32.totalorder %s710_s23, %s706_s19 }
 0x2a1   : > { %p708_p13 = pnand %p707_p12, %p870_p3 }
 0x2a2   : > { %p713_p4 = por %p712_p2, %p711_p1 }
 0x2a3   : > { %p709_p0 = pneg %p708_p13 }
 0x2a5   : > { %p714_p5 = pnand %p713_p4, %p709_p0 }
 0x2a7   : > { %717 = shalt.err (!%p714_p5)
}
 0x2a8   : > { %600 = dma.vmem_to_hbm [thread:$0]  (%p870_p3), %s463_s7, 64, %s460_s6, %s449_s9  }
 0x2a9 PF: > { %p606_p6 = scmp.ge.s32.totalorder %s784_s22, 2  ;;  %s474_s30 = sand.u32 1, %s756_s15  }
 0x2aa   : > { %s475_s20 = scalar_lea.sflag [#allocation4], %s474_s30 }
 0x2ab   : > { %p603_p7 = pnand %p606_p6, %p880_p9 }
 0x2ad   : > { %p604_p8 = pneg %p603_p7 }
 0x2af   : > { %751 = dma.done.wait (%p604_p8), %s475_s20, 64  }
 0x2b0   : > { %753 = vsyncadd (%p604_p8), %s475_s20, 4294967232  ;;  %s17_s22 = sadd.s32 1, %s784_s22   ;;  %s992_s21 = sld [smem:[#allocation10_spill]] }
 0x2b1   : > { %p14_p10 = scmp.ge.s32.totalorder %s17_s22, 6   ;;  %s993_s18 = sld [smem:[#allocation6_spill]] }
 0x2b2   : > { %s994_s19 = sld [smem:[#allocation7_spill]]  ;;  %s997_s15 = smov %s760_s16 }
 0x2b3   : > { %s995_s20 = sld [smem:[#allocation8_spill]]  ;;  %s998_s16 = smov %s764_s17 }
 0x2b4   : > { %s996_s27 = sld [smem:[#allocation9_spill]] }
 0x2b6   : > { %s999_s17 = smov %s992_s21  ;;  %16 = sbr.rel (!%p14_p10) target bundleno = 5 (0x5), region = 89 }
 0x2ba   : > { %s1000_s21 = smov %s996_s27 }
 0x2bb   :  { %480 = vsyncpa [#allocation4], 1 }
 0x2bc   :  { %482 = vsyncpa [#allocation4 + $0x1], 1 }

</bundles_post_ra>
